<compile_context>
chip_gen: v5e
topology: v5e:2x2
jax: 0.10.0
libtpu: 0.0.40
codegen_flags: <defaults>
</compile_context>

<pallas_src>
import math
from functools import partial

import jax
import jax.numpy as jnp
from jax.experimental import pallas as pl
from jax.experimental.pallas import tpu as pltpu

LANE = 128      # TPU lane width: lane-dense store / MXU N alignment
SUBLANE = 8     # f32 sublane alignment


def _round_up(n, m):
    return (n + m - 1) // m * m


def _cdiv(a, b):
    return -(-a // b)


def _lcm(a, b):
    return a * b // math.gcd(a, b)


def mlp_kernel(x_ref, w1_ref, b1_ref, w2_ref, b2_ref, w3p_ref, b3p_ref, o_ref,
               *, pack):
    """Fused 3-layer MLP on one (tile_b, in_size) batch tile.

    bf16 dot inputs, f32 accumulation on the MXU; bias add + ReLU on the VPU
    in f32.  Layer 3 uses `pack` lane-shifted weight copies so `pack`
    consecutive row-blocks are packed into one 128-lane output row (8x smaller
    writeback for num_classes=16) using only standard matmuls and aligned
    static slices.
    """
    x = x_ref[...]                                              # bf16 (tile_b, in)
    h1 = jnp.dot(x, w1_ref[...], preferred_element_type=jnp.float32) + b1_ref[...]
    h1 = jnp.maximum(h1, 0.0)                                   # f32
    h2 = jnp.dot(h1.astype(jnp.bfloat16), w2_ref[...],
                 preferred_element_type=jnp.float32) + b2_ref[...]
    h2 = jnp.maximum(h2, 0.0)                                   # f32 (tile_b, h_pad)

    T = o_ref.shape[0]                                          # tile_b // pack
    acc = None
    for k in range(pack):                                       # static, small
        hk = h2[k * T:(k + 1) * T, :].astype(jnp.bfloat16)      # aligned slice
        part = jnp.dot(hk, w3p_ref[k], preferred_element_type=jnp.float32)
        acc = part if acc is None else acc + part
    o_ref[...] = acc + b3p_ref[...]


def neural_net_forward(x, params, *, max_tile_b=2048, min_steps=2):
    """x: (B, input_size) float32 (cast to bf16 for streaming).
    params: dict from init_params."""
    w1, b1 = params["l1"]
    w2, b2 = params["l2"]
    w3p, b3p = params["l3p"]
    num_classes = params["num_classes"]
    pack = params["pack"]

    B, in_size = x.shape
    h_pad = w1.shape[1]
    out_lanes = w3p.shape[2]

    # ---- batch tiling -----------------------------------------------------
    # tile_b must be a multiple of:
    #   * pack * 8  (packed f32 output block stays sublane aligned)
    #   * 16        (bf16 x sublane tiling)
    quantum = _lcm(pack * SUBLANE, 16)
    # Keep the double-buffered bf16 x tile comfortably inside scoped VMEM.
    max_tile_b = min(max_tile_b, max(quantum, (8 << 20) // max(1, 2 * in_size)))
    max_tile_b = max(_round_up(max_tile_b, quantum), quantum)
    # >= min_steps grid steps (v7x dual-TC) when the batch spans that many
    # quanta; otherwise as few steps as possible with tiles <= max_tile_b.
    n_steps = max(_cdiv(B, max_tile_b), min(min_steps, _cdiv(B, quantum)))
    tile_b = _round_up(_cdiv(B, n_steps), quantum)
    b_pad = _round_up(B, tile_b)
    grid_n = b_pad // tile_b
    T = tile_b // pack

    x = x.astype(jnp.bfloat16)                 # half-width streamed HBM read
    if b_pad != B:
        x = jnp.pad(x, ((0, b_pad - B), (0, 0)))

    flops = 2 * b_pad * (in_size * h_pad + h_pad * h_pad + h_pad * out_lanes)
    bytes_accessed = (
        2 * b_pad * in_size                                          # x (bf16)
        + 2 * (in_size * h_pad + h_pad * h_pad + pack * h_pad * out_lanes)
        + 4 * (2 * h_pad + out_lanes)                                # biases
        + 4 * (b_pad // pack) * out_lanes)                           # packed out
    cost = pl.CostEstimate(flops=flops, transcendentals=0,
                           bytes_accessed=bytes_accessed)

    out_packed = pl.pallas_call(
        partial(mlp_kernel, pack=pack),
        out_shape=jax.ShapeDtypeStruct((b_pad // pack, out_lanes), jnp.float32),
        grid=(grid_n,),
        in_specs=[
            pl.BlockSpec((tile_b, in_size), lambda i: (i, 0)),   # streamed x
            pl.BlockSpec(w1.shape, lambda i: (0, 0)),            # resident weights
            pl.BlockSpec(b1.shape, lambda i: (0, 0)),
            pl.BlockSpec(w2.shape, lambda i: (0, 0)),
            pl.BlockSpec(b2.shape, lambda i: (0, 0)),
            pl.BlockSpec(w3p.shape, lambda i: (0, 0, 0)),
            pl.BlockSpec(b3p.shape, lambda i: (0, 0)),
        ],
        out_specs=pl.BlockSpec((T, out_lanes), lambda i: (i, 0)),
        compiler_params=pltpu.CompilerParams(
            dimension_semantics=("parallel",)),   # dual-TC sharding on v7x
        cost_estimate=cost,
    )(x, w1, b1, w2, b2, w3p, b3p)

    # ---- un-pack: row g, lanes [k*nc, (k+1)*nc) of tile block i hold the
    # classes of batch row  i*tile_b + k*T + g.
    y = out_packed.reshape(grid_n, T, out_lanes)[:, :, :pack * num_classes]
    y = y.reshape(grid_n, T, pack, num_classes)
    y = jnp.transpose(y, (0, 2, 1, 3)).reshape(b_pad, num_classes)
    return y[:B]


def init_params(key, input_size, hidden_size, num_classes):
    """nn.Linear-style uniform(-1/sqrt(fan_in), +1/sqrt(fan_in)) init.

    Weights stored transposed (in_features, out_features), zero-padded so
    hidden/class dims are 128-lane multiples (semantics preserving), cast to
    bf16 for the MXU.  Layer 3 is additionally stored as `pack` lane-shifted
    copies so the kernel packs `pack` row-blocks into one lane-dense output row.
    """
    h_pad = _round_up(hidden_size, LANE)
    c_pad = _round_up(num_classes, LANE)
    pack = LANE // num_classes if num_classes <= LANE else 1
    out_lanes = c_pad                      # == LANE when num_classes <= LANE

    ks = jax.random.split(key, 6)

    def linear(kw, kb, fan_in, fan_out, in_pad, out_pad):
        bound = 1.0 / math.sqrt(fan_in)
        w = jax.random.uniform(kw, (fan_in, fan_out), jnp.float32, -bound, bound)
        b = jax.random.uniform(kb, (1, fan_out), jnp.float32, -bound, bound)
        wp = jnp.zeros((in_pad, out_pad), jnp.float32).at[:fan_in, :fan_out].set(w)
        bp = jnp.zeros((1, out_pad), jnp.float32).at[:, :fan_out].set(b)
        return wp, bp

    w1, b1 = linear(ks[0], ks[1], input_size, hidden_size, input_size, h_pad)
    w2, b2 = linear(ks[2], ks[3], hidden_size, hidden_size, h_pad, h_pad)
    w3, b3 = linear(ks[4], ks[5], hidden_size, num_classes, h_pad, out_lanes)

    # Lane-shifted copies of layer 3:  w3p[k, :, k*nc + j] = w3[:, j]
    w3p = jnp.zeros((pack, h_pad, out_lanes), jnp.float32)
    b3p = jnp.zeros((1, out_lanes), jnp.float32)
    for k in range(pack):
        w3p = w3p.at[k, :, k * num_classes:(k + 1) * num_classes].set(
            w3[:, :num_classes])
        b3p = b3p.at[:, k * num_classes:(k + 1) * num_classes].set(
            b3[:, :num_classes])

    return {
        "l1": (w1.astype(jnp.bfloat16), b1),
        "l2": (w2.astype(jnp.bfloat16), b2),
        "l3": (w3.astype(jnp.bfloat16), b3),      # plain form (reference)
        "l3p": (w3p.astype(jnp.bfloat16), b3p),   # packed form (kernel)
        "num_classes": num_classes,
        "pack": pack,
    }


def reference_forward(x, params):
    """Pure-JAX reference mirroring the kernel numerics (bf16 dot inputs,
    f32 accumulation) — matches the PyTorch module up to bf16 input rounding."""
    w1, b1 = params["l1"]
    w2, b2 = params["l2"]
    w3, b3 = params["l3"]
    h1 = jnp.maximum(
        jnp.dot(x.astype(jnp.bfloat16), w1,
                preferred_element_type=jnp.float32) + b1, 0.0)
    h2 = jnp.maximum(
        jnp.dot(h1.astype(jnp.bfloat16), w2,
                preferred_element_type=jnp.float32) + b2, 0.0)
    out = jnp.dot(h2.astype(jnp.bfloat16), w3,
                  preferred_element_type=jnp.float32) + b3
    return out[:, :params["num_classes"]]


if __name__ == "__main__":
    input_size, hidden_size, num_classes = 32, 64, 16
    batch = 32

    key = jax.random.PRNGKey(0)
    k_x, k_p = jax.random.split(key)

    x = jax.random.normal(k_x, (batch, input_size), dtype=jnp.float32)
    params = init_params(k_p, input_size, hidden_size, num_classes)

    out = neural_net_forward(x, params)
    out = jax.block_until_ready(out)

    ref = reference_forward(x, params)
    assert out.shape == (batch, num_classes)
    assert jnp.allclose(out, ref, atol=2e-3, rtol=2e-3), "mismatch vs reference"

    print("KERNEL_OK")
</pallas_src>

<mosaic_0001>
module attributes {stable_mosaic.version = 11 : i64} {
  func.func @mlp_kernel(%arg0: i32, %arg1: memref<64x32xbf16, #tpu.memory_space<vmem>>, %arg2: memref<32x128xbf16, #tpu.memory_space<vmem>>, %arg3: memref<1x128xf32, #tpu.memory_space<vmem>>, %arg4: memref<128x128xbf16, #tpu.memory_space<vmem>>, %arg5: memref<1x128xf32, #tpu.memory_space<vmem>>, %arg6: memref<8x128x128xbf16, #tpu.memory_space<vmem>>, %arg7: memref<1x128xf32, #tpu.memory_space<vmem>>, %arg8: memref<8x128xf32, #tpu.memory_space<vmem>>) attributes {dimension_semantics = [#tpu.dimension_semantics<parallel>], iteration_bounds = array<i64: 1>, scalar_prefetch = 0 : i64, scratch_operands = 0 : i64, tpu.core_type = #tpu.core_type<tc>, window_params = [{transform_indices = @transform_0, window_bounds = array<i64: 64, 32>}, {pipeline_mode = #tpu.pipeline_mode<synchronous>, transform_indices = @transform_1, window_bounds = array<i64: 32, 128>}, {pipeline_mode = #tpu.pipeline_mode<synchronous>, transform_indices = @transform_2, window_bounds = array<i64: 1, 128>}, {pipeline_mode = #tpu.pipeline_mode<synchronous>, transform_indices = @transform_3, window_bounds = array<i64: 128, 128>}, {pipeline_mode = #tpu.pipeline_mode<synchronous>, transform_indices = @transform_4, window_bounds = array<i64: 1, 128>}, {pipeline_mode = #tpu.pipeline_mode<synchronous>, transform_indices = @transform_5, window_bounds = array<i64: 8, 128, 128>}, {pipeline_mode = #tpu.pipeline_mode<synchronous>, transform_indices = @transform_6, window_bounds = array<i64: 1, 128>}, {transform_indices = @transform_7, window_bounds = array<i64: 8, 128>}]} {
    %c0 = arith.constant 0 : index
    %c0_0 = arith.constant 0 : index
    %0 = vector.load %arg1[%c0, %c0_0] : memref<64x32xbf16, #tpu.memory_space<vmem>>, vector<64x32xbf16>
    %c0_1 = arith.constant 0 : index
    %c0_2 = arith.constant 0 : index
    %1 = vector.load %arg2[%c0_1, %c0_2] : memref<32x128xbf16, #tpu.memory_space<vmem>>, vector<32x128xbf16>
    %cst = arith.constant dense<0.000000e+00> : vector<64x128xf32>
    %2 = tpu.matmul %0, %1, %cst {dimension_numbers = #tpu.dot_dimension_numbers<[1], [0], [0], [1], [0, 0, 1, 1], [], []>} : vector<64x32xbf16>, vector<32x128xbf16>, vector<64x128xf32> -> vector<64x128xf32>
    %c0_3 = arith.constant 0 : index
    %c0_4 = arith.constant 0 : index
    %3 = vector.load %arg3[%c0_3, %c0_4] : memref<1x128xf32, #tpu.memory_space<vmem>>, vector<1x128xf32>
    %4 = vector.broadcast %3 : vector<1x128xf32> to vector<64x128xf32>
    %5 = arith.addf %2, %4 : vector<64x128xf32>
    %cst_5 = arith.constant 0.000000e+00 : f32
    %6 = vector.broadcast %cst_5 : f32 to vector<64x128xf32>
    %7 = arith.maximumf %5, %6 : vector<64x128xf32>
    %8 = arith.truncf %7 : vector<64x128xf32> to vector<64x128xbf16>
    %c0_6 = arith.constant 0 : index
    %c0_7 = arith.constant 0 : index
    %9 = vector.load %arg4[%c0_6, %c0_7] : memref<128x128xbf16, #tpu.memory_space<vmem>>, vector<128x128xbf16>
    %cst_8 = arith.constant dense<0.000000e+00> : vector<64x128xf32>
    %10 = tpu.matmul %8, %9, %cst_8 {dimension_numbers = #tpu.dot_dimension_numbers<[1], [0], [0], [1], [0, 0, 1, 1], [], []>} : vector<64x128xbf16>, vector<128x128xbf16>, vector<64x128xf32> -> vector<64x128xf32>
    %c0_9 = arith.constant 0 : index
    %c0_10 = arith.constant 0 : index
    %11 = vector.load %arg5[%c0_9, %c0_10] : memref<1x128xf32, #tpu.memory_space<vmem>>, vector<1x128xf32>
    %12 = vector.broadcast %11 : vector<1x128xf32> to vector<64x128xf32>
    %13 = arith.addf %10, %12 : vector<64x128xf32>
    %cst_11 = arith.constant 0.000000e+00 : f32
    %14 = vector.broadcast %cst_11 : f32 to vector<64x128xf32>
    %15 = arith.maximumf %13, %14 : vector<64x128xf32>
    %16 = vector.extract_strided_slice %15 {offsets = [0, 0], sizes = [8, 128], strides = [1, 1]} : vector<64x128xf32> to vector<8x128xf32>
    %17 = arith.truncf %16 : vector<8x128xf32> to vector<8x128xbf16>
    %c0_12 = arith.constant 0 : index
    %c0_13 = arith.constant 0 : index
    %c0_14 = arith.constant 0 : index
    %18 = vector.load %arg6[%c0_12, %c0_13, %c0_14] : memref<8x128x128xbf16, #tpu.memory_space<vmem>>, vector<1x128x128xbf16>
    %19 = vector.shape_cast %18 : vector<1x128x128xbf16> to vector<128x128xbf16>
    %cst_15 = arith.constant dense<0.000000e+00> : vector<8x128xf32>
    %20 = tpu.matmul %17, %19, %cst_15 {dimension_numbers = #tpu.dot_dimension_numbers<[1], [0], [0], [1], [0, 0, 1, 1], [], []>} : vector<8x128xbf16>, vector<128x128xbf16>, vector<8x128xf32> -> vector<8x128xf32>
    %21 = vector.extract_strided_slice %15 {offsets = [8, 0], sizes = [8, 128], strides = [1, 1]} : vector<64x128xf32> to vector<8x128xf32>
    %22 = arith.truncf %21 : vector<8x128xf32> to vector<8x128xbf16>
    %c1 = arith.constant 1 : index
    %c0_16 = arith.constant 0 : index
    %c0_17 = arith.constant 0 : index
    %23 = vector.load %arg6[%c1, %c0_16, %c0_17] : memref<8x128x128xbf16, #tpu.memory_space<vmem>>, vector<1x128x128xbf16>
    %24 = vector.shape_cast %23 : vector<1x128x128xbf16> to vector<128x128xbf16>
    %cst_18 = arith.constant dense<0.000000e+00> : vector<8x128xf32>
    %25 = tpu.matmul %22, %24, %cst_18 {dimension_numbers = #tpu.dot_dimension_numbers<[1], [0], [0], [1], [0, 0, 1, 1], [], []>} : vector<8x128xbf16>, vector<128x128xbf16>, vector<8x128xf32> -> vector<8x128xf32>
    %26 = arith.addf %20, %25 : vector<8x128xf32>
    %27 = vector.extract_strided_slice %15 {offsets = [16, 0], sizes = [8, 128], strides = [1, 1]} : vector<64x128xf32> to vector<8x128xf32>
    %28 = arith.truncf %27 : vector<8x128xf32> to vector<8x128xbf16>
    %c2 = arith.constant 2 : index
    %c0_19 = arith.constant 0 : index
    %c0_20 = arith.constant 0 : index
    %29 = vector.load %arg6[%c2, %c0_19, %c0_20] : memref<8x128x128xbf16, #tpu.memory_space<vmem>>, vector<1x128x128xbf16>
    %30 = vector.shape_cast %29 : vector<1x128x128xbf16> to vector<128x128xbf16>
    %cst_21 = arith.constant dense<0.000000e+00> : vector<8x128xf32>
    %31 = tpu.matmul %28, %30, %cst_21 {dimension_numbers = #tpu.dot_dimension_numbers<[1], [0], [0], [1], [0, 0, 1, 1], [], []>} : vector<8x128xbf16>, vector<128x128xbf16>, vector<8x128xf32> -> vector<8x128xf32>
    %32 = arith.addf %26, %31 : vector<8x128xf32>
    %33 = vector.extract_strided_slice %15 {offsets = [24, 0], sizes = [8, 128], strides = [1, 1]} : vector<64x128xf32> to vector<8x128xf32>
    %34 = arith.truncf %33 : vector<8x128xf32> to vector<8x128xbf16>
    %c3 = arith.constant 3 : index
    %c0_22 = arith.constant 0 : index
    %c0_23 = arith.constant 0 : index
    %35 = vector.load %arg6[%c3, %c0_22, %c0_23] : memref<8x128x128xbf16, #tpu.memory_space<vmem>>, vector<1x128x128xbf16>
    %36 = vector.shape_cast %35 : vector<1x128x128xbf16> to vector<128x128xbf16>
    %cst_24 = arith.constant dense<0.000000e+00> : vector<8x128xf32>
    %37 = tpu.matmul %34, %36, %cst_24 {dimension_numbers = #tpu.dot_dimension_numbers<[1], [0], [0], [1], [0, 0, 1, 1], [], []>} : vector<8x128xbf16>, vector<128x128xbf16>, vector<8x128xf32> -> vector<8x128xf32>
    %38 = arith.addf %32, %37 : vector<8x128xf32>
    %39 = vector.extract_strided_slice %15 {offsets = [32, 0], sizes = [8, 128], strides = [1, 1]} : vector<64x128xf32> to vector<8x128xf32>
    %40 = arith.truncf %39 : vector<8x128xf32> to vector<8x128xbf16>
    %c4 = arith.constant 4 : index
    %c0_25 = arith.constant 0 : index
    %c0_26 = arith.constant 0 : index
    %41 = vector.load %arg6[%c4, %c0_25, %c0_26] : memref<8x128x128xbf16, #tpu.memory_space<vmem>>, vector<1x128x128xbf16>
    %42 = vector.shape_cast %41 : vector<1x128x128xbf16> to vector<128x128xbf16>
    %cst_27 = arith.constant dense<0.000000e+00> : vector<8x128xf32>
    %43 = tpu.matmul %40, %42, %cst_27 {dimension_numbers = #tpu.dot_dimension_numbers<[1], [0], [0], [1], [0, 0, 1, 1], [], []>} : vector<8x128xbf16>, vector<128x128xbf16>, vector<8x128xf32> -> vector<8x128xf32>
    %44 = arith.addf %38, %43 : vector<8x128xf32>
    %45 = vector.extract_strided_slice %15 {offsets = [40, 0], sizes = [8, 128], strides = [1, 1]} : vector<64x128xf32> to vector<8x128xf32>
    %46 = arith.truncf %45 : vector<8x128xf32> to vector<8x128xbf16>
    %c5 = arith.constant 5 : index
    %c0_28 = arith.constant 0 : index
    %c0_29 = arith.constant 0 : index
    %47 = vector.load %arg6[%c5, %c0_28, %c0_29] : memref<8x128x128xbf16, #tpu.memory_space<vmem>>, vector<1x128x128xbf16>
    %48 = vector.shape_cast %47 : vector<1x128x128xbf16> to vector<128x128xbf16>
    %cst_30 = arith.constant dense<0.000000e+00> : vector<8x128xf32>
    %49 = tpu.matmul %46, %48, %cst_30 {dimension_numbers = #tpu.dot_dimension_numbers<[1], [0], [0], [1], [0, 0, 1, 1], [], []>} : vector<8x128xbf16>, vector<128x128xbf16>, vector<8x128xf32> -> vector<8x128xf32>
    %50 = arith.addf %44, %49 : vector<8x128xf32>
    %51 = vector.extract_strided_slice %15 {offsets = [48, 0], sizes = [8, 128], strides = [1, 1]} : vector<64x128xf32> to vector<8x128xf32>
    %52 = arith.truncf %51 : vector<8x128xf32> to vector<8x128xbf16>
    %c6 = arith.constant 6 : index
    %c0_31 = arith.constant 0 : index
    %c0_32 = arith.constant 0 : index
    %53 = vector.load %arg6[%c6, %c0_31, %c0_32] : memref<8x128x128xbf16, #tpu.memory_space<vmem>>, vector<1x128x128xbf16>
    %54 = vector.shape_cast %53 : vector<1x128x128xbf16> to vector<128x128xbf16>
    %cst_33 = arith.constant dense<0.000000e+00> : vector<8x128xf32>
    %55 = tpu.matmul %52, %54, %cst_33 {dimension_numbers = #tpu.dot_dimension_numbers<[1], [0], [0], [1], [0, 0, 1, 1], [], []>} : vector<8x128xbf16>, vector<128x128xbf16>, vector<8x128xf32> -> vector<8x128xf32>
    %56 = arith.addf %50, %55 : vector<8x128xf32>
    %57 = vector.extract_strided_slice %15 {offsets = [56, 0], sizes = [8, 128], strides = [1, 1]} : vector<64x128xf32> to vector<8x128xf32>
    %58 = arith.truncf %57 : vector<8x128xf32> to vector<8x128xbf16>
    %c7 = arith.constant 7 : index
    %c0_34 = arith.constant 0 : index
    %c0_35 = arith.constant 0 : index
    %59 = vector.load %arg6[%c7, %c0_34, %c0_35] : memref<8x128x128xbf16, #tpu.memory_space<vmem>>, vector<1x128x128xbf16>
    %60 = vector.shape_cast %59 : vector<1x128x128xbf16> to vector<128x128xbf16>
    %cst_36 = arith.constant dense<0.000000e+00> : vector<8x128xf32>
    %61 = tpu.matmul %58, %60, %cst_36 {dimension_numbers = #tpu.dot_dimension_numbers<[1], [0], [0], [1], [0, 0, 1, 1], [], []>} : vector<8x128xbf16>, vector<128x128xbf16>, vector<8x128xf32> -> vector<8x128xf32>
    %62 = arith.addf %56, %61 : vector<8x128xf32>
    %c0_37 = arith.constant 0 : index
    %c0_38 = arith.constant 0 : index
    %63 = vector.load %arg7[%c0_37, %c0_38] : memref<1x128xf32, #tpu.memory_space<vmem>>, vector<1x128xf32>
    %64 = vector.broadcast %63 : vector<1x128xf32> to vector<8x128xf32>
    %65 = arith.addf %62, %64 : vector<8x128xf32>
    %c0_39 = arith.constant 0 : index
    %c0_40 = arith.constant 0 : index
    %66 = vector.load %arg8[%c0_39, %c0_40] : memref<8x128xf32, #tpu.memory_space<vmem>>, vector<8x128xf32>
    tpu.vector_store %arg8[%c0_39, %c0_40], %65 {strides = array<i32>} : memref<8x128xf32, #tpu.memory_space<vmem>>, vector<8x128xf32>,
    return
  }
  func.func @transform_0(%arg0: i32) -> (i32, i32) {
    %c0_i32 = arith.constant 0 : i32
    %c0_i32_0 = arith.constant 0 : i32
    return %arg0, %c0_i32 : i32, i32
  }
  func.func @transform_1(%arg0: i32) -> (i32, i32) {
    %c0_i32 = arith.constant 0 : i32
    %c0_i32_0 = arith.constant 0 : i32
    %c0_i32_1 = arith.constant 0 : i32
    return %c0_i32, %c0_i32_0 : i32, i32
  }
  func.func @transform_2(%arg0: i32) -> (i32, i32) {
    %c0_i32 = arith.constant 0 : i32
    %c0_i32_0 = arith.constant 0 : i32
    %c0_i32_1 = arith.constant 0 : i32
    return %c0_i32, %c0_i32_0 : i32, i32
  }
  func.func @transform_3(%arg0: i32) -> (i32, i32) {
    %c0_i32 = arith.constant 0 : i32
    %c0_i32_0 = arith.constant 0 : i32
    %c0_i32_1 = arith.constant 0 : i32
    return %c0_i32, %c0_i32_0 : i32, i32
  }
  func.func @transform_4(%arg0: i32) -> (i32, i32) {
    %c0_i32 = arith.constant 0 : i32
    %c0_i32_0 = arith.constant 0 : i32
    %c0_i32_1 = arith.constant 0 : i32
    return %c0_i32, %c0_i32_0 : i32, i32
  }
  func.func @transform_5(%arg0: i32) -> (i32, i32, i32) {
    %c0_i32 = arith.constant 0 : i32
    %c0_i32_0 = arith.constant 0 : i32
    %c0_i32_1 = arith.constant 0 : i32
    %c0_i32_2 = arith.constant 0 : i32
    return %c0_i32, %c0_i32_0, %c0_i32_1 : i32, i32, i32
  }
  func.func @transform_6(%arg0: i32) -> (i32, i32) {
    %c0_i32 = arith.constant 0 : i32
    %c0_i32_0 = arith.constant 0 : i32
    %c0_i32_1 = arith.constant 0 : i32
    return %c0_i32, %c0_i32_0 : i32, i32
  }
  func.func @transform_7(%arg0: i32) -> (i32, i32) {
    %c0_i32 = arith.constant 0 : i32
    %c0_i32_0 = arith.constant 0 : i32
    return %arg0, %c0_i32 : i32, i32
  }
}

</mosaic_0001>

<bundles_post_ra>
// kernel: tpu_custom_call.1
= control target key start
LH: loop header
LB: loop body
LE: loop exit
PB: predicated region body
PF: predicated region fallthrough
CT: control target
= control target key end

     0   :  { %12 = vsyncpa [#allocation3], 0  ;;  %s1499_s0 = inlined_call_operand.vmem [shape: bf16[64,32], index: 0, kind: input, shape index: {}]   ;;  %s1500_s1 = inlined_call_operand.vmem [shape: bf16[32,128], index: 1, kind: input, shape index: {}]   ;;  %s1501_s2 = inlined_call_operand.vmem [shape: f32[1,128], index: 2, kind: input, shape index: {}]   ;;  %s1502_s3 = inlined_call_operand.hbm [shape: bf16[128,128], index: 3, kind: input, shape index: {}]   ;;  %s1503_s4 = inlined_call_operand.vmem [shape: f32[1,128], index: 4, kind: input, shape index: {}]   ;;  %s1504_s5 = inlined_call_operand.hbm [shape: bf16[8,128,128], index: 5, kind: input, shape index: {}]   ;;  %s1505_s6 = inlined_call_operand.vmem [shape: f32[1,128], index: 6, kind: input, shape index: {}]   ;;  %s1506_s7 = inlined_call_operand.hbm [shape: f32[8,128], index: 7, kind: output, shape index: {}]  }
   0x1   :  { %13 = vsyncpa [#allocation6], 0 }
   0x2   :  { %14 = vsyncpa [#allocation4], 0  ;;  %s25_s26 = sshll.u32 %s1502_s3, 4  ;;  %s1408_s27 = smov [#allocation2]   ;;  %s26_s26 = int_to_ptr.hbm [resolvable:$true] %s25_s26 }
   0x3   :  { %s27_s28 = sshll.u32 %s1408_s27, 4  ;;  %s40_s8 = sshll.u32 %s1504_s5, 4  ;;  %s28_s28 = int_to_ptr.vmem [resolvable:$true] %s27_s28  ;;  %s41_s8 = int_to_ptr.hbm [resolvable:$true] %s40_s8 }
   0x4   :  { %s1409_s9 = smov 64   ;;  %s1410_s10 = smov 4  }
   0x5   :  { %33 = dma.hbm_to_vmem [thread:$0]  %s26_s26, 1024, %s28_s28, [#allocation3], %s1409_s9, %s1409_s9, %s1410_s10  }
   0x6   :  { %s1411_s11 = smov [#allocation5]  }
   0x7   :  { %s42_s12 = sshll.u32 %s1411_s11, 4  ;;  %s43_s12 = int_to_ptr.vmem [resolvable:$true] %s42_s12 }
   0x8   :  { %48 = dma.hbm_to_vmem [thread:$0]  %s41_s8, 8192, %s43_s12, [#allocation6], %s1409_s9, %s1409_s9, %s1410_s10  }
   0x9   :  { %1402 = dma.done.wait [#allocation3], 1024  }
   0xa   :  { %1403 = vsyncadd [#allocation3], 4294966272 }
   0xb   :  { %1404 = dma.done.wait [#allocation6], 8192  }
   0xc   :  { %1405 = vsyncadd [#allocation6], 4294959104  ;;  %v1249_v0 = vld [vmem:[%s1500_s1 + $0x8] sm:$0xff]  ;;  %v1248_v1 = vld [vmem:[%s1500_s1] sm:$0xff]  ;;  %vm108_vm0 = vcmask 261120   ;;  %s1412_s25 = smov [#allocation7]  }
   0xd   :  { %127 = vmatpush.bf16.msra.mxu0 %v1249_v0  ;;  %v1244_v2 = vld [vmem:[%s1499_s0] sm:$0xff]  ;;  %v1245_v3 = vld [vmem:[%s1499_s0 + $0x8] sm:$0xff]  ;;  %v1257_v4 = vld [vmem:[#allocation2 + $0x38] sm:$0xff]  ;;  %s915_s26 = sshll.u32 %s1412_s25, 4  ;;  %s917_s29 = sshll.u32 %s1506_s7, 4  ;;  %s916_s26 = int_to_ptr.vmem [resolvable:$true] %s915_s26  ;;  %s918_s29 = int_to_ptr.hbm [resolvable:$true] %s917_s29 }
   0xe   :  { %230 = vmatpush.bf16.msra.mxu1 %v1257_v4  ;;  %v1256_v5 = vld [vmem:[#allocation2 + $0x30] sm:$0xff]  ;;  %v1255_v6 = vld [vmem:[#allocation2 + $0x28] sm:$0xff]  ;;  %v1254_v7 = vld [vmem:[#allocation2 + $0x20] sm:$0xff] }
   0xf   :  { %v1246_v8 = vld [vmem:[%s1499_s0 + $0x10] sm:$0xff]  ;;  %v1247_v9 = vld [vmem:[%s1499_s0 + $0x18] sm:$0xff]  ;;  %v1251_v12 = vld [vmem:[#allocation2 + $0x8] sm:$0xff] }
  0x10   :  { %v1253_v10 = vld [vmem:[#allocation2 + $0x18] sm:$0xff]  ;;  %v1252_v11 = vld [vmem:[#allocation2 + $0x10] sm:$0xff]  ;;  %v1250_v13 = vld [vmem:[#allocation2] sm:$0xff] }
  0x11   :  { %128 = vmatpush.bf16.msra.mxu0 %v1248_v1  ;;  %v1327_v15 = vld [vmem:[%s1501_s2] ss:$0 sm:$0xff]  ;;  %v1273_v29 = vld [vmem:[#allocation5 + $0x78] sm:$0xff]  ;;  %v1272_v32 = vld [vmem:[#allocation5 + $0x70] sm:$0xff] }
  0x12   :  { %231 = vmatpush.bf16.msra.mxu1 %v1256_v5  ;;  %v1265_v30 = vld [vmem:[#allocation5 + $0x38] sm:$0xff]  ;;  %350 = vmatpush.bf16.msra.mxu2 %v1273_v29  ;;  %v1264_v33 = vld [vmem:[#allocation5 + $0x30] sm:$0xff]  ;;  %v1271_v34 = vld [vmem:[#allocation5 + $0x68] sm:$0xff] }
  0x13   :  { %411 = vmatpush.bf16.msra.mxu3 %v1265_v30  ;;  %v1263_v35 = vld [vmem:[#allocation5 + $0x28] sm:$0xff]  ;;  %v1270_v39 = vld [vmem:[#allocation5 + $0x60] sm:$0xff]  ;;  %v1269_v44 = vld [vmem:[#allocation5 + $0x58] sm:$0xff] }
  0x14   :  { %952 = vmatmul.msk.bf16.vlgmr.msra.gmra.mxu0 %vm108_vm0, %v1244_v2  ;;  %v1262_v40 = vld [vmem:[#allocation5 + $0x20] sm:$0xff]  ;;  %v1261_v45 = vld [vmem:[#allocation5 + $0x18] sm:$0xff]  ;;  %v1268_v47 = vld [vmem:[#allocation5 + $0x50] sm:$0xff] }
  0x15   :  { %v1260_v48 = vld [vmem:[#allocation5 + $0x10] sm:$0xff]  ;;  %v1267_v49 = vld [vmem:[#allocation5 + $0x48] sm:$0xff]  ;;  %v1266_v54 = vld [vmem:[#allocation5 + $0x40] sm:$0xff] }
  0x16   :  { %232 = vmatpush.bf16.msra.mxu1 %v1255_v6  ;;  %351 = vmatpush.bf16.msra.mxu2 %v1272_v32  ;;  %v1259_v50 = vld [vmem:[#allocation5 + $0x8] sm:$0xff]  ;;  %v1258_v55 = vld [vmem:[#allocation5] sm:$0xff]  ;;  %v1281_v56 = vld [vmem:[#allocation5 + $0xb8] sm:$0xff] }
  0x17   :  { %412 = vmatpush.bf16.msra.mxu3 %v1264_v33  ;;  %v1280_v60 = vld [vmem:[#allocation5 + $0xb0] sm:$0xff]  ;;  %v1289_v61 = vld [vmem:[#allocation5 + $0xf8] sm:$0xff]  ;;  %v1279_v62 = vld [vmem:[#allocation5 + $0xa8] sm:$0xff] }
  0x18   :  { %v1288_v63 = vld [vmem:[#allocation5 + $0xf0] sm:$0xff]  ;;  %v1297_v0 = vld [vmem:[#allocation5 + $0x138] sm:$0xff]  ;;  %v1278_v2 = vld [vmem:[#allocation5 + $0xa0] sm:$0xff] }
  0x19   :  { %v1305_v1 = vld [vmem:[#allocation5 + $0x178] sm:$0xff]  ;;  %650 = vmatpush.bf16.msrb.mxu0 %v1297_v0  ;;  %v1296_v5 = vld [vmem:[#allocation5 + $0x130] sm:$0xff]  ;;  %v1286_v6 = vld [vmem:[#allocation5 + $0xe0] sm:$0xff] }
  0x1a   :  { %233 = vmatpush.bf16.msra.mxu1 %v1254_v7  ;;  %352 = vmatpush.bf16.msra.mxu2 %v1271_v34  ;;  %v1277_v4 = vld [vmem:[#allocation5 + $0x98] sm:$0xff]  ;;  %v1304_v7 = vld [vmem:[#allocation5 + $0x170] sm:$0xff]  ;;  %v1306_v0 = vld [vmem:[#allocation5 + $0x180] sm:$0xff] }
  0x1b   :  { %413 = vmatpush.bf16.msra.mxu3 %v1263_v35  ;;  %v1321_v29 = vld [vmem:[#allocation5 + $0x1f8] sm:$0xff]  ;;  %v1320_v33 = vld [vmem:[#allocation5 + $0x1f0] sm:$0xff]  ;;  %v1298_v35 = vld [vmem:[#allocation5 + $0x140] sm:$0xff] }
  0x1d   :  { %651 = vmatpush.bf16.msrb.mxu0 %v1296_v5 }
  0x1e   :  { %234 = vmatpush.bf16.msra.mxu1 %v1253_v10  ;;  %353 = vmatpush.bf16.msra.mxu2 %v1270_v39  ;;  %v1295_v10 = vld [vmem:[#allocation5 + $0x128] sm:$0xff] }
  0x1f   :  { %414 = vmatpush.bf16.msra.mxu3 %v1262_v40 }
  0x21   :  { %652 = vmatpush.bf16.msrb.mxu0 %v1295_v10 }
  0x22   :  { %235 = vmatpush.bf16.msra.mxu1 %v1252_v11  ;;  %354 = vmatpush.bf16.msra.mxu2 %v1269_v44  ;;  %v1275_v11 = vld [vmem:[#allocation5 + $0x88] sm:$0xff]  ;;  %v1317_v44 = vld [vmem:[#allocation5 + $0x1d8] sm:$0xff] }
  0x23   :  { %415 = vmatpush.bf16.msra.mxu3 %v1261_v45 }
  0x24   :  { %953 = vmatmul.msk.bf16.gmra.mxu0 %vm108_vm0, %v1245_v3  ;;  %v1287_v3 = vld [vmem:[#allocation5 + $0xe8] sm:$0xff] }
  0x26   :  { %236 = vmatpush.bf16.msra.mxu1 %v1251_v12  ;;  %355 = vmatpush.bf16.msra.mxu2 %v1268_v47  ;;  %v1284_v12 = vld [vmem:[#allocation5 + $0xd0] sm:$0xff]  ;;  %v1310_v47 = vld [vmem:[#allocation5 + $0x1a0] sm:$0xff] }
  0x27   :  { %416 = vmatpush.bf16.msra.mxu3 %v1260_v48  ;;  %v1316_v48 = vld [vmem:[#allocation5 + $0x1d0] sm:$0xff] }
  0x2a   :  { %237 = vmatpush.bf16.msra.mxu1 %v1250_v13  ;;  %356 = vmatpush.bf16.msra.mxu2 %v1267_v49  ;;  %v1294_v13 = vld [vmem:[#allocation5 + $0x120] sm:$0xff] }
  0x2b   :  { %417 = vmatpush.bf16.msra.mxu3 %v1259_v50  ;;  %653 = vmatpush.bf16.msrb.mxu0 %v1294_v13 }
  0x2e   :  { %357 = vmatpush.bf16.msra.mxu2 %v1266_v54  ;;  %730 = vmatpush.bf16.msrb.mxu1 %v1305_v1 }
  0x2f   :  { %418 = vmatpush.bf16.msra.mxu3 %v1258_v55 }
  0x32   :  { %490 = vmatpush.bf16.msrb.mxu2 %v1281_v56  ;;  %731 = vmatpush.bf16.msrb.mxu1 %v1304_v7 }
  0x33   :  { %570 = vmatpush.bf16.msrb.mxu3 %v1289_v61  ;;  %v1307_v61 = vld [vmem:[#allocation5 + $0x188] sm:$0xff] }
  0x34   :  { %954 = vmatmul.msk.bf16.gmra.mxu0 %vm108_vm0, %v1246_v8  ;;  %v1276_v8 = vld [vmem:[#allocation5 + $0x90] sm:$0xff] }
  0x36   :  { %491 = vmatpush.bf16.msrb.mxu2 %v1280_v60 }
  0x37   :  { %571 = vmatpush.bf16.msrb.mxu3 %v1288_v63 }
  0x3a   :  { %492 = vmatpush.bf16.msrb.mxu2 %v1279_v62 }
  0x3b   :  { %572 = vmatpush.bf16.msrb.mxu3 %v1287_v3 }
  0x3e   :  { %493 = vmatpush.bf16.msrb.mxu2 %v1278_v2 }
  0x3f   :  { %573 = vmatpush.bf16.msrb.mxu3 %v1286_v6 }
  0x42   :  { %494 = vmatpush.bf16.msrb.mxu2 %v1277_v4 }
  0x44   :  { %955 = vmatmul.msk.bf16.gmra.mxu0 %vm108_vm0, %v1247_v9  ;;  %v1285_v9 = vld [vmem:[#allocation5 + $0xd8] sm:$0xff] }
  0x45   :  { %574 = vmatpush.bf16.msrb.mxu3 %v1285_v9 }
  0x46   :  { %495 = vmatpush.bf16.msrb.mxu2 %v1276_v8 }
  0x49   :  { %575 = vmatpush.bf16.msrb.mxu3 %v1284_v12 }
  0x4a   :  { %496 = vmatpush.bf16.msrb.mxu2 %v1275_v11 }
  0x91   :  { %v130_v14 = vpop.f32.mrf.mxu0 }
  0x92   :  { %v131_v16 = vadd.f32 %v1327_v15, %v130_v14  ;;  %v1303_v14 = vld [vmem:[#allocation5 + $0x168] sm:$0xff] }
  0x93   :  { %732 = vmatpush.bf16.msrb.mxu1 %v1303_v14 }
  0x94   :  { %v150_v19 = vmax.f32 %v131_v16, 0.0  ;;  %v1283_v16 = vld [vmem:[#allocation5 + $0xc8] sm:$0xff] }
  0x95   :  { %576 = vmatpush.bf16.msrb.mxu3 %v1283_v16 }
  0x99   :  { %v132_v17 = vpop.f32.mrf.mxu0 }
  0x9a   :  { %v133_v18 = vadd.f32 %v1327_v15, %v132_v17  ;;  %v1293_v17 = vld [vmem:[#allocation5 + $0x118] sm:$0xff] }
  0x9b   :  { %654 = vmatpush.bf16.msrb.mxu0 %v1293_v17 }
  0x9c   :  { %v151_v20 = vmax.f32 %v133_v18, 0.0  ;;  %v1302_v18 = vld [vmem:[#allocation5 + $0x160] sm:$0xff] }
  0x9d   :  { %733 = vmatpush.bf16.msrb.mxu1 %v1302_v18 }
  0x9e   :  { %v158_v21 = vpack.c.bf16 %v151_v20, %v150_v19  ;;  %v1282_v19 = vld [vmem:[#allocation5 + $0xc0] sm:$0xff]  ;;  %v1292_v20 = vld [vmem:[#allocation5 + $0x110] sm:$0xff] }
  0x9f   :  { %577 = vmatpush.bf16.msrb.mxu3 %v1282_v19  ;;  %655 = vmatpush.bf16.msrb.mxu0 %v1292_v20 }
  0xa0   :  { %238 = vmatmul.bf16.vlgmr.msra.gmra.mxu1 %v158_v21  ;;  %v1483_v21 = vld [vmem:[%s1503_s4] ss:$0 sm:$0xff] }
  0xa1   :  { %v135_v22 = vpop.f32.mrf.mxu0 }
  0xa2   :  { %v136_v23 = vadd.f32 %v1327_v15, %v135_v22  ;;  %v1291_v22 = vld [vmem:[#allocation5 + $0x108] sm:$0xff] }
  0xa3   :  { %656 = vmatpush.bf16.msrb.mxu0 %v1291_v22 }
  0xa4   :  { %v152_v26 = vmax.f32 %v136_v23, 0.0  ;;  %v1301_v23 = vld [vmem:[#allocation5 + $0x158] sm:$0xff] }
  0xa5   :  { %734 = vmatpush.bf16.msrb.mxu1 %v1301_v23 }
  0xa9   :  { %v137_v24 = vpop.f32.mrf.mxu0 }
  0xaa   :  { %v138_v25 = vadd.f32 %v1327_v15, %v137_v24 }
  0xac   :  { %v153_v27 = vmax.f32 %v138_v25, 0.0 }
  0xae   :  { %v159_v28 = vpack.c.bf16 %v153_v27, %v152_v26  ;;  %v1290_v26 = vld [vmem:[#allocation5 + $0x100] sm:$0xff]  ;;  %v1300_v27 = vld [vmem:[#allocation5 + $0x150] sm:$0xff] }
  0xaf   :  { %735 = vmatpush.bf16.msrb.mxu1 %v1300_v27  ;;  %657 = vmatpush.bf16.msrb.mxu0 %v1290_v26 }
  0xb0   :  { %243 = vmatmul.bf16.gmra.mxu1 %v159_v28 }
  0xb1   :  { %v140_v31 = vpop.f32.mrf.mxu0 }
  0xb2   :  { %v141_v36 = vadd.f32 %v1327_v15, %v140_v31  ;;  %v1299_v31 = vld [vmem:[#allocation5 + $0x148] sm:$0xff] }
  0xb3   :  { %736 = vmatpush.bf16.msrb.mxu1 %v1299_v31  ;;  %v1329_v31 = vld [vmem:[%s1505_s6] ss:$0 sm:$0xff] }
  0xb4   :  { %v154_v41 = vmax.f32 %v141_v36, 0.0 }
  0xb7   :  { %737 = vmatpush.bf16.msrb.mxu1 %v1298_v35 }
  0xb9   :  { %v142_v37 = vpop.f32.mrf.mxu0 }
  0xba   :  { %v143_v38 = vadd.f32 %v1327_v15, %v142_v37  ;;  %v1313_v37 = vld [vmem:[#allocation5 + $0x1b8] sm:$0xff] }
  0xbc   :  { %v155_v42 = vmax.f32 %v143_v38, 0.0  ;;  %v1319_v38 = vld [vmem:[#allocation5 + $0x1e8] sm:$0xff] }
  0xbe   :  { %v160_v43 = vpack.c.bf16 %v155_v42, %v154_v41  ;;  %v1312_v41 = vld [vmem:[#allocation5 + $0x1b0] sm:$0xff]  ;;  %v1318_v42 = vld [vmem:[#allocation5 + $0x1e0] sm:$0xff] }
  0xc0   :  { %248 = vmatmul.bf16.gmra.mxu1 %v160_v43  ;;  %v1311_v43 = vld [vmem:[#allocation5 + $0x1a8] sm:$0xff] }
  0xc1   :  { %v145_v46 = vpop.f32.mrf.mxu0 }
  0xc2   :  { %v146_v51 = vadd.f32 %v1327_v15, %v145_v46 }
  0xc4   :  { %v156_v57 = vmax.f32 %v146_v51, 0.0 }
  0xc9   :  { %v147_v52 = vpop.f32.mrf.mxu0 }
  0xca   :  { %v148_v53 = vadd.f32 %v1327_v15, %v147_v52  ;;  %v1274_v15 = vld [vmem:[#allocation5 + $0x80] sm:$0xff]  ;;  %v1309_v52 = vld [vmem:[#allocation5 + $0x198] sm:$0xff] }
  0xcb   :  { %497 = vmatpush.bf16.msrb.mxu2 %v1274_v15 }
  0xcc   :  { %v157_v58 = vmax.f32 %v148_v53, 0.0  ;;  %v1315_v53 = vld [vmem:[#allocation5 + $0x1c8] sm:$0xff] }
  0xce   :  { %v161_v59 = vpack.c.bf16 %v157_v58, %v156_v57  ;;  %v1308_v57 = vld [vmem:[#allocation5 + $0x190] sm:$0xff]  ;;  %v1314_v58 = vld [vmem:[#allocation5 + $0x1c0] sm:$0xff] }
  0xd0   :  { %253 = vmatmul.bf16.gmra.mxu1 %v161_v59 }
 0x11d   :  { %v239_v24 = vpop.f32.mrf.mxu1 }
 0x11e   :  { %v240_v25 = vadd.f32 %v1483_v21, %v239_v24 }
 0x120   :  { %v259_v28 = vmax.f32 %v240_v25, 0.0 }
 0x122   :  { %v267_v30 = vpack.c.bf16 %v259_v28, %v259_v28 }
 0x124   :  { %419 = vmatmul.bf16.vlgmr.msra.gmra.mxu3 %v267_v30 }
 0x125   :  { %v241_v32 = vpop.f32.mrf.mxu1  ;;  %890 = vmatpush.bf16.msra.mxu3 %v1321_v29 }
 0x126   :  { %v242_v34 = vadd.f32 %v1483_v21, %v241_v32 }
 0x128   :  { %v260_v36 = vmax.f32 %v242_v34, 0.0 }
 0x129   :  { %891 = vmatpush.bf16.msra.mxu3 %v1320_v33 }
 0x12a   :  { %v284_v39 = vpack.c.bf16 %v260_v36, %v260_v36 }
 0x12c   :  { %358 = vmatmul.bf16.vlgmr.msra.gmra.mxu2 %v284_v39 }
 0x12d   :  { %v244_v40 = vpop.f32.mrf.mxu1  ;;  %810 = vmatpush.bf16.msra.mxu2 %v1313_v37  ;;  %892 = vmatpush.bf16.msra.mxu3 %v1319_v38 }
 0x12e   :  { %v245_v45 = vadd.f32 %v1483_v21, %v244_v40 }
 0x130   :  { %v261_v49 = vmax.f32 %v245_v45, 0.0 }
 0x131   :  { %811 = vmatpush.bf16.msra.mxu2 %v1312_v41  ;;  %893 = vmatpush.bf16.msra.mxu3 %v1318_v42 }
 0x132   :  { %v424_v54 = vpack.c.bf16 %v261_v49, %v261_v49 }
 0x135   :  { %v246_v46 = vpop.f32.mrf.mxu1  ;;  %812 = vmatpush.bf16.msra.mxu2 %v1311_v43  ;;  %894 = vmatpush.bf16.msra.mxu3 %v1317_v44 }
 0x136   :  { %v247_v50 = vadd.f32 %v1483_v21, %v246_v46 }
 0x138   :  { %v262_v51 = vmax.f32 %v247_v50, 0.0 }
 0x139   :  { %813 = vmatpush.bf16.msra.mxu2 %v1310_v47  ;;  %895 = vmatpush.bf16.msra.mxu3 %v1316_v48 }
 0x13a   :  { %v504_v55 = vpack.c.bf16 %v262_v51, %v262_v51 }
 0x13c   :  { %498 = vmatmul.bf16.vlgmr.msrb.gmra.mxu2 %v424_v54  ;;  %578 = vmatmul.bf16.vlgmr.msrb.gmra.mxu3 %v504_v55 }
 0x13d   :  { %v249_v56 = vpop.f32.mrf.mxu1  ;;  %814 = vmatpush.bf16.msra.mxu2 %v1309_v52  ;;  %896 = vmatpush.bf16.msra.mxu3 %v1315_v53 }
 0x13e   :  { %v250_v59 = vadd.f32 %v1483_v21, %v249_v56 }
 0x140   :  { %v263_v60 = vmax.f32 %v250_v59, 0.0 }
 0x141   :  { %815 = vmatpush.bf16.msra.mxu2 %v1308_v57  ;;  %897 = vmatpush.bf16.msra.mxu3 %v1314_v58 }
 0x142   :  { %v584_v62 = vpack.c.bf16 %v263_v60, %v263_v60 }
 0x144   :  { %658 = vmatmul.bf16.vlgmr.msrb.gmra.mxu0 %v584_v62 }
 0x145   :  { %v251_v63 = vpop.f32.mrf.mxu1  ;;  %816 = vmatpush.bf16.msra.mxu2 %v1307_v61 }
 0x146   :  { %v252_v1 = vadd.f32 %v1483_v21, %v251_v63 }
 0x148   :  { %v264_v2 = vmax.f32 %v252_v1, 0.0 }
 0x149   :  { %817 = vmatpush.bf16.msra.mxu2 %v1306_v0 }
 0x14a   :  { %v664_v3 = vpack.c.bf16 %v264_v2, %v264_v2 }
 0x14c   :  { %738 = vmatmul.bf16.vlgmr.msrb.gmra.mxu1 %v664_v3 }
 0x14d   :  { %v254_v4 = vpop.f32.mrf.mxu1 }
 0x14e   :  { %v255_v5 = vadd.f32 %v1483_v21, %v254_v4 }
 0x150   :  { %v265_v6 = vmax.f32 %v255_v5, 0.0 }
 0x152   :  { %v744_v7 = vpack.c.bf16 %v265_v6, %v265_v6 }
 0x154   :  { %818 = vmatmul.bf16.vlgmr.msra.gmra.mxu2 %v744_v7 }
 0x155   :  { %v256_v8 = vpop.f32.mrf.mxu1 }
 0x156   :  { %v257_v9 = vadd.f32 %v1483_v21, %v256_v8 }
 0x158   :  { %v266_v10 = vmax.f32 %v257_v9, 0.0 }
 0x15a   :  { %v824_v11 = vpack.c.bf16 %v266_v10, %v266_v10 }
 0x15c   :  { %898 = vmatmul.bf16.vlgmr.msra.gmra.mxu3 %v824_v11 }
 0x1a7   :  { %v420_v12 = vpop.f32.mrf.mxu3 }
 0x1af   :  { %v359_v13 = vpop.f32.mrf.mxu2  ;;  %v422_v14 = vpop.f32.mrf.mxu3 }
 0x1b0   :  { %v421_v24 = vadd.f32 %v420_v12, %v359_v13 }
 0x1b7   :  { %v361_v15 = vpop.f32.mrf.mxu2 }
 0x1bf   :  { %v499_v16 = vpop.f32.mrf.mxu2  ;;  %v579_v17 = vpop.f32.mrf.mxu3 }
 0x1c0   :  { %v503_v26 = vadd.f32 %v499_v16, %v421_v24 }
 0x1c1   :  { %v659_v18 = vpop.f32.mrf.mxu0 }
 0x1c2   :  { %v583_v27 = vadd.f32 %v579_v17, %v503_v26 }
 0x1c4   :  { %v663_v21 = vadd.f32 %v659_v18, %v583_v27 }
 0x1c7   :  { %v501_v19 = vpop.f32.mrf.mxu2  ;;  %v581_v20 = vpop.f32.mrf.mxu3 }
 0x1c9   :  { %v661_v22 = vpop.f32.mrf.mxu0  ;;  %v739_v23 = vpop.f32.mrf.mxu1 }
 0x1ca   :  { %v743_v29 = vadd.f32 %v739_v23, %v663_v21 }
 0x1d1   :  { %v741_v25 = vpop.f32.mrf.mxu1 }
 0x1d7   :  { %v819_v28 = vpop.f32.mrf.mxu2 }
 0x1d8   :  { %v823_v30 = vadd.f32 %v819_v28, %v743_v29 }
 0x1df   :  { %v821_v32 = vpop.f32.mrf.mxu2  ;;  %v899_v33 = vpop.f32.mrf.mxu3 }
 0x1e0   :  { %v903_v34 = vadd.f32 %v899_v33, %v823_v30 }
 0x1e2   :  { %v908_v35 = vadd.f32 %v1329_v31, %v903_v34 }
 0x1e4   :  { %909 = vst [vmem:[#allocation7] sm:$0xff] %v908_v35 }
 0x1e5   :  { %920 = dma.vmem_to_hbm [thread:$0]  %s916_s26, 128, %s918_s29, [#allocation4]  }
 0x1e7   :  { %v901_v36 = vpop.f32.mrf.mxu3 }
 0x1e8   :  { %1406 = dma.done.wait [#allocation4], 128  }
 0x1e9   :  { %1407 = vsyncadd [#allocation4], 4294967168 }
 0x1ea   :  { %925 = vsyncpa [#allocation3], 1 }
 0x1eb   :  { %926 = vsyncpa [#allocation6], 1 }
 0x1ec   :  { %927 = vsyncpa [#allocation4], 1 }

</bundles_post_ra>
